<compile_context>
chip_gen: v6e
topology: v6e:2x2x1
jax: 0.10.0
libtpu: 0.0.40
codegen_flags: <defaults>
</compile_context>

<pallas_src>
import jax
import jax.numpy as jnp
from jax.experimental import pallas as pl
from jax.experimental.pallas import tpu as pltpu

LANE = 128          # vreg lane width: trailing feature dims padded to this
SUB_BF16 = 16       # bf16 packs two rows per sublane -> node dim padded to 16
MAX_TILE_N = 256    # node-reduction tile (bounds streamed x VMEM footprint)
MAX_TILE_FOUT = 512  # output-feature tile (keeps W block small on v7x's VMEM)


def _round_up(v, m):
    return m * ((v + m - 1) // m)


def sgconv_mean_kernel(s_ref, x_ref, wt_ref, b_ref, o_ref, m_acc):
    """grid = (f_out tiles [parallel], node tiles [arbitrary reduction])."""
    k = pl.program_id(1)

    @pl.when(k == 0)
    def _():
        m_acc[...] = jnp.zeros_like(m_acc)

    # Partial node reduction: (1, TILE_N) @ (TILE_N, F_in_pad) on the MXU in
    # bf16, accumulated into an f32 VMEM scratch (no bf16 round trip of m).
    m_acc[...] += jnp.dot(s_ref[...], x_ref[...],
                          preferred_element_type=jnp.float32)

    @pl.when(k == pl.num_programs(1) - 1)
    def _():
        # Final linear layer + bias, once per f_out tile, all in f32.
        o = jnp.dot(m_acc[...], wt_ref[...].astype(jnp.float32),
                    preferred_element_type=jnp.float32)
        o_ref[...] = o + b_ref[...]


@jax.jit
def _sgconv_forward_padded(x, edge_index, wt_pad, b_pad):
    """x: [N, F_in] f32, edge_index: [2, E] int32, wt_pad: [F_in_pad, F_out_pad]
    bf16, b_pad: [1, F_out_pad] f32. Returns [1, F_out_pad] f32."""
    n, f_in = x.shape
    f_in_pad, f_out_pad = wt_pad.shape

    # ---- gcn_norm glue collapsed with the trailing node-mean into a length-N
    # vector s. Matches PyG add_remaining_self_loops: existing self-loop edges
    # contribute nothing, exactly one unit self-loop per node is added.
    row0, col0 = edge_index[0], edge_index[1]
    self_loops = jnp.arange(n, dtype=edge_index.dtype)
    w0 = jnp.where(row0 != col0, 1.0, 0.0).astype(jnp.float32)
    row = jnp.concatenate([row0, self_loops])
    col = jnp.concatenate([col0, self_loops])
    w = jnp.concatenate([w0, jnp.ones((n,), jnp.float32)])
    # TODO(synk): edge-indexed segment-sums (data-dependent scatter/gather)
    # stay in plain JAX; no Pallas-TPU win at O(E) cost.
    deg = jax.ops.segment_sum(w, col, num_segments=n)              # in-deg(+self)
    dis = jnp.where(deg > 0, jax.lax.rsqrt(deg), 0.0)              # deg^-1/2
    t = jax.ops.segment_sum(w * dis[col], row, num_segments=n)     # sum_c dis[c]
    s = dis * t * (1.0 / n)                                        # fold node-mean

    # ---- tiling (static shapes) ----
    tile_n = min(MAX_TILE_N, _round_up(n, SUB_BF16))
    n_pad = _round_up(n, tile_n)
    tile_fout = min(MAX_TILE_FOUT, f_out_pad)
    while f_out_pad % tile_fout:
        tile_fout -= LANE
    grid = (f_out_pad // tile_fout, n_pad // tile_n)

    # ---- single bf16 cast + zero pad of the streamed operands (no f32 padded
    # copies; zeros do not change the result). W/bias prepared outside.
    s_pad = jnp.pad(s.astype(jnp.bfloat16)[None, :], ((0, 0), (0, n_pad - n)))
    x_pad = jnp.pad(x.astype(jnp.bfloat16),
                    ((0, n_pad - n), (0, f_in_pad - f_in)))

    cost = pl.CostEstimate(
        flops=2 * n_pad * f_in_pad + 2 * f_in_pad * f_out_pad,
        transcendentals=0,
        bytes_accessed=2 * (s_pad.size + x_pad.size + wt_pad.size)
        + 4 * (b_pad.size + f_out_pad),
    )

    out_pad = pl.pallas_call(
        sgconv_mean_kernel,
        out_shape=jax.ShapeDtypeStruct((1, f_out_pad), jnp.float32),
        grid_spec=pltpu.PrefetchScalarGridSpec(
            num_scalar_prefetch=0,
            grid=grid,
            in_specs=[
                pl.BlockSpec((1, tile_n), lambda j, k: (0, k)),            # s
                pl.BlockSpec((tile_n, f_in_pad), lambda j, k: (k, 0)),     # x
                pl.BlockSpec((f_in_pad, tile_fout), lambda j, k: (0, j)),  # W^T
                pl.BlockSpec((1, tile_fout), lambda j, k: (0, j)),         # bias
            ],
            out_specs=pl.BlockSpec((1, tile_fout), lambda j, k: (0, j)),
            scratch_shapes=[pltpu.VMEM((1, f_in_pad), jnp.float32)],
        ),
        compiler_params=pltpu.CompilerParams(
            dimension_semantics=("parallel", "arbitrary")),
        cost_estimate=cost,
    )(s_pad, x_pad, wt_pad, b_pad)
    return out_pad


def prepare_params(weight, bias):
    """Static weight prep, hoisted out of the per-call forward (done once):
    transpose, pad to lane-aligned shapes, cast W to bf16."""
    f_out, f_in = weight.shape
    f_in_pad = _round_up(f_in, LANE)
    f_out_pad = _round_up(f_out, LANE)
    wt_pad = jnp.zeros((f_in_pad, f_out_pad), jnp.bfloat16)
    wt_pad = wt_pad.at[:f_in, :f_out].set(weight.T.astype(jnp.bfloat16))
    b_pad = jnp.zeros((1, f_out_pad), jnp.float32).at[0, :f_out].set(
        bias.astype(jnp.float32))
    return wt_pad, b_pad


def make_sgconv_forward(weight, bias):
    """Returns forward(x, edge_index) -> (1, F_out); W prep done exactly once."""
    f_out = weight.shape[0]
    wt_pad, b_pad = prepare_params(weight, bias)

    def forward(x, edge_index):
        out_pad = _sgconv_forward_padded(x, edge_index, wt_pad, b_pad)
        return out_pad[:, :f_out]

    return forward


if __name__ == "__main__":
    key = jax.random.PRNGKey(0)
    k_x, k_e, k_w = jax.random.split(key, 3)

    # Small shapes consistent with the forward pass (graph conv + node mean).
    N_NODES = 16     # graph nodes
    N_EDGES = 40     # directed edges
    IN_DIM = 32      # INPUT_DIMENSION (scaled down)
    OUT_DIM = 64     # OUTPUT_DIMENSION (scaled down)

    x = jax.random.normal(k_x, (N_NODES, IN_DIM), dtype=jnp.float32)
    edge_index = jax.random.randint(k_e, (2, N_EDGES), 0, N_NODES,
                                    dtype=jnp.int32)

    # Parameter shapes match PyG SGConv's Linear(in, out, bias=True).
    limit = (6.0 / (IN_DIM + OUT_DIM)) ** 0.5
    weight = jax.random.uniform(
        k_w, (OUT_DIM, IN_DIM), minval=-limit, maxval=limit, dtype=jnp.float32)
    bias = jnp.zeros((OUT_DIM,), jnp.float32)

    forward = make_sgconv_forward(weight, bias)   # static W prep hoisted (once)
    out = forward(x, edge_index)
    out = jax.block_until_ready(out)
    assert out.shape == (1, OUT_DIM)
    assert jnp.all(jnp.isfinite(out))

    # Plain-JAX f32 reference (dense A_norm + mean) for a loose sanity check
    # (bf16 operands in the kernel -> loose tolerance).
    n = N_NODES
    row0, col0 = edge_index[0], edge_index[1]
    sl = jnp.arange(n, dtype=edge_index.dtype)
    w0 = jnp.where(row0 != col0, 1.0, 0.0).astype(jnp.float32)
    row = jnp.concatenate([row0, sl])
    col = jnp.concatenate([col0, sl])
    w = jnp.concatenate([w0, jnp.ones((n,), jnp.float32)])
    deg = jax.ops.segment_sum(w, col, num_segments=n)
    dis = jnp.where(deg > 0, deg ** -0.5, 0.0)
    a_hat = jnp.zeros((n, n), jnp.float32).at[col, row].add(
        w * dis[row] * dis[col])
    ref = jnp.mean((a_hat @ x) @ weight.T + bias, axis=0, keepdims=True)
    assert jnp.max(jnp.abs(out - ref)) < 5e-2

    print("KERNEL_OK")
</pallas_src>

<mosaic_0001>
module attributes {stable_mosaic.version = 11 : i64} {
  func.func private @main(%arg0: i32) attributes {dimension_semantics = [#tpu.dimension_semantics<core_parallel>], iteration_bounds = array<i64: 2>, tpu.core_type = #tpu.core_type<sc_scalar_subcore>, window_params = []} {
    return
  }
}

module attributes {stable_mosaic.version = 11 : i64} {
  func.func private @main(%arg0: i32) attributes {dimension_semantics = [#tpu.dimension_semantics<core_parallel>], iteration_bounds = array<i64: 2>, tpu.core_type = #tpu.core_type<sc_scalar_subcore>, window_params = []} {
    return
  }
}

module attributes {stable_mosaic.version = 11 : i64} {
  func.func @sgconv_mean_kernel(%arg0: i32, %arg1: i32, %arg2: memref<1x16xbf16, #tpu.memory_space<vmem>>, %arg3: memref<16x128xbf16, #tpu.memory_space<vmem>>, %arg4: memref<128x128xbf16, #tpu.memory_space<vmem>>, %arg5: memref<1x128xf32, #tpu.memory_space<vmem>>, %arg6: memref<1x128xf32, #tpu.memory_space<vmem>>, %arg7: memref<1x128xf32, #tpu.memory_space<vmem>>) attributes {dimension_semantics = [#tpu.dimension_semantics<parallel>, #tpu.dimension_semantics<arbitrary>], iteration_bounds = array<i64: 1, 1>, scalar_prefetch = 0 : i64, scratch_operands = 1 : i64, tpu.core_type = #tpu.core_type<tc>, window_params = [{transform_indices = @transform_0, window_bounds = array<i64: 1, 16>}, {transform_indices = @transform_1, window_bounds = array<i64: 16, 128>}, {transform_indices = @transform_2, window_bounds = array<i64: 128, 128>}, {transform_indices = @transform_3, window_bounds = array<i64: 1, 128>}, {transform_indices = @transform_4, window_bounds = array<i64: 1, 128>}]} {
    %c0_i32 = arith.constant 0 : i32
    %0 = arith.cmpi eq, %arg1, %c0_i32 : i32
    %1 = arith.extui %0 : i1 to i32
    %c0_i32_0 = arith.constant 0 : i32
    %2 = arith.cmpi ne, %1, %c0_i32_0 : i32
    scf.if %2 {
      %cst_10 = arith.constant 0.000000e+00 : f32
      %12 = vector.broadcast %cst_10 : f32 to vector<1x128xf32>
      %c0_11 = arith.constant 0 : index
      %c0_12 = arith.constant 0 : index
      %13 = vector.load %arg7[%c0_11, %c0_12] : memref<1x128xf32, #tpu.memory_space<vmem>>, vector<1x128xf32>
      tpu.vector_store %arg7[%c0_11, %c0_12], %12 {strides = array<i32>} : memref<1x128xf32, #tpu.memory_space<vmem>>, vector<1x128xf32>,
    } else {
    }
    %c0 = arith.constant 0 : index
    %c0_1 = arith.constant 0 : index
    %3 = vector.load %arg7[%c0, %c0_1] : memref<1x128xf32, #tpu.memory_space<vmem>>, vector<1x128xf32>
    %c0_2 = arith.constant 0 : index
    %c0_3 = arith.constant 0 : index
    %4 = vector.load %arg2[%c0_2, %c0_3] : memref<1x16xbf16, #tpu.memory_space<vmem>>, vector<1x16xbf16>
    %c0_4 = arith.constant 0 : index
    %c0_5 = arith.constant 0 : index
    %5 = vector.load %arg3[%c0_4, %c0_5] : memref<16x128xbf16, #tpu.memory_space<vmem>>, vector<16x128xbf16>
    %cst = arith.constant dense<0.000000e+00> : vector<1x128xf32>
    %6 = tpu.matmul %4, %5, %cst {dimension_numbers = #tpu.dot_dimension_numbers<[1], [0], [0], [1], [0, 0, 1, 1], [], []>} : vector<1x16xbf16>, vector<16x128xbf16>, vector<1x128xf32> -> vector<1x128xf32>
    %7 = arith.addf %3, %6 : vector<1x128xf32>
    %c0_6 = arith.constant 0 : index
    %c0_7 = arith.constant 0 : index
    %8 = vector.load %arg7[%c0_6, %c0_7] : memref<1x128xf32, #tpu.memory_space<vmem>>, vector<1x128xf32>
    tpu.vector_store %arg7[%c0_6, %c0_7], %7 {strides = array<i32>} : memref<1x128xf32, #tpu.memory_space<vmem>>, vector<1x128xf32>,
    %c0_i32_8 = arith.constant 0 : i32
    %9 = arith.cmpi eq, %arg1, %c0_i32_8 : i32
    %10 = arith.extui %9 : i1 to i32
    %c0_i32_9 = arith.constant 0 : i32
    %11 = arith.cmpi ne, %10, %c0_i32_9 : i32
    scf.if %11 {
      %c0_10 = arith.constant 0 : index
      %c0_11 = arith.constant 0 : index
      %12 = vector.load %arg7[%c0_10, %c0_11] : memref<1x128xf32, #tpu.memory_space<vmem>>, vector<1x128xf32>
      %c0_12 = arith.constant 0 : index
      %c0_13 = arith.constant 0 : index
      %13 = vector.load %arg4[%c0_12, %c0_13] : memref<128x128xbf16, #tpu.memory_space<vmem>>, vector<128x128xbf16>
      %14 = arith.extf %13 : vector<128x128xbf16> to vector<128x128xf32>
      %cst_14 = arith.constant dense<0.000000e+00> : vector<1x128xf32>
      %15 = tpu.matmul %12, %14, %cst_14 {dimension_numbers = #tpu.dot_dimension_numbers<[1], [0], [0], [1], [0, 0, 1, 1], [], []>} : vector<1x128xf32>, vector<128x128xf32>, vector<1x128xf32> -> vector<1x128xf32>
      %c0_15 = arith.constant 0 : index
      %c0_16 = arith.constant 0 : index
      %16 = vector.load %arg5[%c0_15, %c0_16] : memref<1x128xf32, #tpu.memory_space<vmem>>, vector<1x128xf32>
      %17 = arith.addf %15, %16 : vector<1x128xf32>
      %c0_17 = arith.constant 0 : index
      %c0_18 = arith.constant 0 : index
      %18 = vector.load %arg6[%c0_17, %c0_18] : memref<1x128xf32, #tpu.memory_space<vmem>>, vector<1x128xf32>
      tpu.vector_store %arg6[%c0_17, %c0_18], %17 {strides = array<i32>} : memref<1x128xf32, #tpu.memory_space<vmem>>, vector<1x128xf32>,
    } else {
    }
    return
  }
  func.func @transform_0(%arg0: i32, %arg1: i32) -> (i32, i32) {
    %c0_i32 = arith.constant 0 : i32
    %c0_i32_0 = arith.constant 0 : i32
    return %c0_i32, %arg1 : i32, i32
  }
  func.func @transform_1(%arg0: i32, %arg1: i32) -> (i32, i32) {
    %c0_i32 = arith.constant 0 : i32
    %c0_i32_0 = arith.constant 0 : i32
    return %arg1, %c0_i32 : i32, i32
  }
  func.func @transform_2(%arg0: i32, %arg1: i32) -> (i32, i32) {
    %c0_i32 = arith.constant 0 : i32
    %c0_i32_0 = arith.constant 0 : i32
    return %c0_i32, %arg0 : i32, i32
  }
  func.func @transform_3(%arg0: i32, %arg1: i32) -> (i32, i32) {
    %c0_i32 = arith.constant 0 : i32
    %c0_i32_0 = arith.constant 0 : i32
    return %c0_i32, %arg0 : i32, i32
  }
  func.func @transform_4(%arg0: i32, %arg1: i32) -> (i32, i32) {
    %c0_i32 = arith.constant 0 : i32
    %c0_i32_0 = arith.constant 0 : i32
    return %c0_i32, %arg0 : i32, i32
  }
}

</mosaic_0001>

<bundles_post_ra>
// kernel: _sgconv_forward_padded.1
= control target key start
LH: loop header
LB: loop body
LE: loop exit
PB: predicated region body
PF: predicated region fallthrough
CT: control target
= control target key end

     0   :  { %v329_v1 = vmov 0.0   ;;  %vm330_vm0 = vmmov 0   ;;  %vm34_vm1 = vcmask 130048   ;;  %s413_s0 = inlined_call_operand.vmem [shape: bf16[1,16], index: 0, kind: input, shape index: {}]   ;;  %s414_s1 = inlined_call_operand.vmem [shape: bf16[16,128], index: 1, kind: input, shape index: {}]   ;;  %s415_s2 = inlined_call_operand.vmem [shape: bf16[128,128], index: 2, kind: input, shape index: {}]   ;;  %s416_s3 = inlined_call_operand.vmem [shape: f32[1,128], index: 3, kind: input, shape index: {}]   ;;  %s417_s4 = inlined_call_operand.hbm [shape: f32[1,128], index: 4, kind: output, shape index: {}]  }
   0x1   :  { %v306_v0 = vld [vmem:[%s414_s1] sm:$0xff]   ;;  %262 = vmatprep.subr.bf16.mxu0 %v329_v1  ;;  %23 = vst [vmem:[#allocation2] sm:$0x1] %v329_v1  ;;  %268 = vmatprep.subr.mxu1 %v329_v1  ;;  %v242_v2 = vld [vmem:[%s415_s2 + $0x38] sm:$0xff]   ;;  %v241_v3 = vld [vmem:[%s415_s2 + $0x30] sm:$0xff]  }
   0x2   :  { %263 = vmatpush3.bf16.msra.mxu0 %v306_v0  ;;  %264 = vmatprep.mubr.msk.bf16.mxu0 %vm330_vm0, %v329_v1  ;;  %v25_v4 = vld [vmem:[%s413_s0] sm:$0x1]  ;;  %v234_v5 = vunpack.c.l.bf16 %v242_v2  ;;  %v235_v6 = vunpack.c.h.bf16 %v242_v2 }
   0x3   :  { %300 = vmatprep.mubr.msk.f32.mxu1 %vm330_vm0, %v329_v1 }
   0x4   :  { %9 = vsyncpa [#allocation4], 0  ;;  %269 = vmatpush3.msra.mxu1 %v235_v6  ;;  %v231_v7 = vunpack.c.h.bf16 %v241_v3  ;;  %v240_v8 = vld [vmem:[%s415_s2 + $0x28] sm:$0xff]   ;;  %v230_v9 = vunpack.c.l.bf16 %v241_v3  ;;  %v239_v11 = vld [vmem:[%s415_s2 + $0x20] sm:$0xff]   ;;  %s331_s8 = smov [#allocation3]  }
   0x5   :  { %265 = vmatmul.mubr.msk.bf16.vlgmr.msra.gmra.mxu0 %vm34_vm1, %v25_v4  ;;  %270 = vmatprep.subr.mxu1 %v329_v1  ;;  %v227_v10 = vunpack.c.h.bf16 %v240_v8  ;;  %v226_v12 = vunpack.c.l.bf16 %v240_v8  ;;  %v223_v13 = vunpack.c.h.bf16 %v239_v11  ;;  %v238_v14 = vld [vmem:[%s415_s2 + $0x18] sm:$0xff]   ;;  %v222_v15 = vunpack.c.l.bf16 %v239_v11  ;;  %v237_v18 = vld [vmem:[%s415_s2 + $0x10] sm:$0xff]   ;;  %v236_v21 = vld [vmem:[%s415_s2 + $0x8] sm:$0xff]   ;;  %s194_s9 = sshll.u32 %s331_s8, 4  ;;  %s195_s9 = int_to_ptr.vmem [resolvable:$true] %s194_s9 }
   0x6   :  { %271 = vmatpush3.msra.mxu1 %v234_v5  ;;  %v219_v16 = vunpack.c.h.bf16 %v238_v14  ;;  %v218_v17 = vunpack.c.l.bf16 %v238_v14  ;;  %v215_v19 = vunpack.c.h.bf16 %v237_v18  ;;  %v214_v20 = vunpack.c.l.bf16 %v237_v18  ;;  %v205_v24 = vld [vmem:[%s415_s2] sm:$0xff]   ;;  %s307_s10 = scalar_lea.vmem %s195_s9, 16  ;;  %s311_s11 = scalar_lea.vmem %s195_s9, 32 }
   0x7   :  { %272 = vmatprep.subr.mxu1 %v329_v1  ;;  %v211_v22 = vunpack.c.h.bf16 %v236_v21  ;;  %v210_v23 = vunpack.c.l.bf16 %v236_v21  ;;  %v207_v25 = vunpack.c.h.bf16 %v205_v24  ;;  %v206_v26 = vunpack.c.l.bf16 %v205_v24  ;;  %v116_v34 = vld [vmem:[%s416_s3] sm:$0x1]  ;;  %p308_p0 = scmp.ne.s32.totalorder %s195_s9, %s307_s10  ;;  %p312_p1 = scmp.lt.s32.totalorder %s195_s9, %s195_s9 }
   0x8   :  { %273 = vmatpush3.msra.mxu1 %v231_v7  ;;  %v24_v27 = vld [vmem:[#allocation2] sm:$0x1]  ;;  %p313_p2 = scmp.lt.s32.totalorder %s311_s11, %s307_s10 }
   0x9   :  { %274 = vmatprep.subr.mxu1 %v329_v1 }
   0xa   :  { %275 = vmatpush3.msra.mxu1 %v230_v9  ;;  %p314_p3 = por %p313_p2, %p312_p1 }
   0xb   :  { %276 = vmatprep.subr.mxu1 %v329_v1 }
   0xc   :  { %277 = vmatpush3.msra.mxu1 %v227_v10  ;;  %p315_p4 = pnand %p314_p3, %p308_p0 }
   0xd   :  { %278 = vmatprep.subr.mxu1 %v329_v1 }
   0xe   :  { %279 = vmatpush3.msra.mxu1 %v226_v12 }
   0xf   :  { %280 = vmatprep.subr.mxu1 %v329_v1 }
  0x10   :  { %281 = vmatpush3.msra.mxu1 %v223_v13 }
  0x11   :  { %282 = vmatprep.subr.mxu1 %v329_v1 }
  0x12   :  { %283 = vmatpush3.msra.mxu1 %v222_v15 }
  0x13   :  { %284 = vmatprep.subr.mxu1 %v329_v1 }
  0x14   :  { %285 = vmatpush3.msra.mxu1 %v219_v16 }
  0x15   :  { %286 = vmatprep.subr.mxu1 %v329_v1 }
  0x16   :  { %287 = vmatpush3.msra.mxu1 %v218_v17 }
  0x17   :  { %288 = vmatprep.subr.mxu1 %v329_v1 }
  0x18   :  { %289 = vmatpush3.msra.mxu1 %v215_v19 }
  0x19   :  { %290 = vmatprep.subr.mxu1 %v329_v1 }
  0x1a   :  { %291 = vmatpush3.msra.mxu1 %v214_v20 }
  0x1b   :  { %292 = vmatprep.subr.mxu1 %v329_v1 }
  0x1c   :  { %293 = vmatpush3.msra.mxu1 %v211_v22 }
  0x1d   :  { %294 = vmatprep.subr.mxu1 %v329_v1 }
  0x1e   :  { %295 = vmatpush3.msra.mxu1 %v210_v23 }
  0x1f   :  { %296 = vmatprep.subr.mxu1 %v329_v1 }
  0x20   :  { %297 = vmatpush3.msra.mxu1 %v207_v25 }
  0x21   :  { %298 = vmatprep.subr.mxu1 %v329_v1 }
  0x22   :  { %299 = vmatpush3.msra.mxu1 %v206_v26 }
  0xc5   :  { %v72_v28 = vpop.f32.mrf.mxu0 }
  0xc6   :  { %v78_v29 = vadd.f32 %v72_v28, %v24_v27 }
  0xc7   :  { %v266_v30 = vpop.f32.mrf.mxu0 }
  0xc8   :  { %79 = vst [vmem:[#allocation2] sm:$0x1] %v78_v29 }
  0xc9   :  { %v75_v31 = vpop.f32.mrf.mxu0 }
  0xcb   :  { %v267_v32 = vpop.f32.mrf.mxu0 }
  0xcf   :  { %v83_v33 = vld [vmem:[#allocation2] sm:$0x1] }
  0xd0   :  { %301 = vmatmul.mubr.f32.vlgmr.msra.gmra.mxu1 %v83_v33 }
 0x190   :  { %v183_v35 = vpop.f32.mrf.mxu1 }
 0x191   :  { %v184_v36 = vadd.f32 %v183_v35, %v116_v34 }
 0x192   :  { %v302_v37 = vpop.f32.mrf.mxu1 }
 0x193   :  { %187 = vst [vmem:[#allocation3] sm:$0x1] %v184_v36 }
 0x194   :  { %318 = shalt.err (!%p315_p4)
}
 0x195   :  { %197 = dma.vmem_to_hbm [thread:$0]  %s195_s9, 16, %s417_s4, [#allocation4]  }
 0x196   :  { %327 = dma.done.wait [#allocation4], 16  }
 0x197   :  { %328 = vsyncadd [#allocation4], 4294967280 }
 0x198   :  { %201 = vsyncpa [#allocation4], 1 }

</bundles_post_ra>
